<compile_context>
chip_gen: v5e
topology: v5e:2x2
jax: 0.10.0
libtpu: 0.0.40
codegen_flags: <defaults>
</compile_context>

<pallas_src>
import functools

import jax
import jax.numpy as jnp
import numpy as np
from jax.experimental import pallas as pl
from jax.experimental.pallas import tpu as pltpu


def _identity_kernel(x_ref, o_ref):
    # Pure pass-through on the current (row_tile, lane) VMEM block.
    o_ref[...] = x_ref[...]


def _vmem_plan(lane: int, itemsize: int):
    """Generation-aware (row_tile_max, vmem_limit_bytes)."""
    try:
        cap = int(pltpu.get_tpu_info().vmem_capacity_bytes)
    except Exception:
        cap = 64 * 1024 * 1024  # conservative fallback (v7x-sized)
    # 2 input + 2 output double-buffered blocks live at once.
    live_budget = min(cap // 2, 64 * 1024 * 1024)   # 64 MiB v5e/v6e, 32 MiB v7x
    block_bytes = live_budget // 4                  # 16 MiB v5e/v6e, 8 MiB v7x
    row_tile_max = max(8, (block_bytes // (lane * itemsize)) // 8 * 8)
    vmem_limit = min(cap - 8 * 1024 * 1024, live_budget + 8 * 1024 * 1024)
    return row_tile_max, vmem_limit


@functools.lru_cache(maxsize=None)
def _build_copy_fn(shape, dtype_name):
    """Build (and cache) a jitted reshape -> pallas copy -> reshape pipeline."""
    dtype = jnp.dtype(dtype_name)
    itemsize = dtype.itemsize
    total = int(np.prod(shape))

    # Lane-dense last dim: largest of {512, 256, 128} that divides the
    # element count (no padding).  Fallback: pad to a 128 multiple (rare).
    lane = None
    for cand in (512, 256, 128):
        if total % cand == 0:
            lane = cand
            break
    if lane is None:
        lane = 128
        rows = pl.cdiv(total, lane)
        pad = rows * lane - total
    else:
        rows = total // lane
        pad = 0

    row_tile_max, vmem_limit = _vmem_plan(lane, itemsize)
    # Small inputs: one block equal to the full array (always legal).
    row_tile = rows if rows <= row_tile_max else row_tile_max
    grid = (pl.cdiv(rows, row_tile),)

    copy_call = pl.pallas_call(
        _identity_kernel,
        out_shape=jax.ShapeDtypeStruct((rows, lane), dtype),
        grid_spec=pltpu.PrefetchScalarGridSpec(
            num_scalar_prefetch=0,
            grid=grid,
            # Row-tiled, full lane extent: contiguous, unit-stride DMAs and
            # unmasked full-width stores (edge block masked only if uneven).
            in_specs=[pl.BlockSpec((row_tile, lane), lambda i: (i, 0))],
            out_specs=pl.BlockSpec((row_tile, lane), lambda i: (i, 0)),
        ),
        compiler_params=pltpu.CompilerParams(
            # Row-chunk axis is parallel -> shards across v7x's 2 TensorCores.
            dimension_semantics=("parallel",),
            vmem_limit_bytes=int(vmem_limit),
        ),
        cost_estimate=pl.CostEstimate(
            flops=0,
            transcendentals=0,
            bytes_accessed=2 * (rows * lane) * itemsize,
        ),
    )

    def pipeline(x):
        flat = x.reshape(-1)
        if pad:
            flat = jnp.pad(flat, (0, pad))
        y2d = copy_call(flat.reshape(rows, lane))
        y = y2d.reshape(-1)
        if pad:
            y = y[:total]
        return y.reshape(shape)

    return jax.jit(pipeline)


class BackboneBase:
    """JAX/Pallas port of the abstract BackboneBase."""

    def __init__(self, in_channels: int):
        self.in_channels = in_channels
        # Abstract base class: no parameters.
        self.params = {}

    @property
    def num_parameters(self):
        return sum(int(jnp.size(p)) for p in jax.tree_util.tree_leaves(self.params))

    def freeze_weights(self):
        # No trainable state in the base class; nothing to freeze.
        pass

    def forward(self, x: jax.Array) -> jax.Array:
        """Pass x (NCHW float tensor) through the Pallas identity kernel."""
        assert x.ndim == 4, "expected NCHW input"
        assert x.shape[1] == self.in_channels, "channel mismatch"
        fn = _build_copy_fn(tuple(int(d) for d in x.shape), str(x.dtype))
        return fn(x)

    def __call__(self, x):
        return self.forward(x)


if __name__ == "__main__":
    key = jax.random.PRNGKey(0)
    B, C, H, W = 2, 4, 16, 16
    x = jax.random.normal(key, (B, C, H, W), dtype=jnp.float32)
    x_host = np.asarray(x)

    backbone = BackboneBase(in_channels=C)
    y = backbone(x)
    y = jax.block_until_ready(y)

    assert y.shape == (B, C, H, W)
    assert y.dtype == jnp.float32
    assert np.allclose(np.asarray(y), x_host)
    assert backbone.num_parameters == 0

    # Second call exercises the per-shape jit cache (no retrace).
    y2 = jax.block_until_ready(backbone(x))
    assert np.allclose(np.asarray(y2), x_host)

    print("KERNEL_OK")
</pallas_src>

<mosaic_0001>
module attributes {stable_mosaic.version = 11 : i64} {
  func.func @_identity_kernel(%arg0: i32, %arg1: memref<4x512xf32, #tpu.memory_space<vmem>>, %arg2: memref<4x512xf32, #tpu.memory_space<vmem>>) attributes {dimension_semantics = [#tpu.dimension_semantics<parallel>], iteration_bounds = array<i64: 1>, scalar_prefetch = 0 : i64, scratch_operands = 0 : i64, tpu.core_type = #tpu.core_type<tc>, window_params = [{transform_indices = @transform_0, window_bounds = array<i64: 4, 512>}, {transform_indices = @transform_1, window_bounds = array<i64: 4, 512>}]} {
    %c0 = arith.constant 0 : index
    %c0_0 = arith.constant 0 : index
    %0 = vector.load %arg1[%c0, %c0_0] : memref<4x512xf32, #tpu.memory_space<vmem>>, vector<4x512xf32>
    %c0_1 = arith.constant 0 : index
    %c0_2 = arith.constant 0 : index
    %1 = vector.load %arg2[%c0_1, %c0_2] : memref<4x512xf32, #tpu.memory_space<vmem>>, vector<4x512xf32>
    tpu.vector_store %arg2[%c0_1, %c0_2], %0 {strides = array<i32>} : memref<4x512xf32, #tpu.memory_space<vmem>>, vector<4x512xf32>,
    return
  }
  func.func @transform_0(%arg0: i32) -> (i32, i32) {
    %c0_i32 = arith.constant 0 : i32
    %c0_i32_0 = arith.constant 0 : i32
    return %arg0, %c0_i32 : i32, i32
  }
  func.func @transform_1(%arg0: i32) -> (i32, i32) {
    %c0_i32 = arith.constant 0 : i32
    %c0_i32_0 = arith.constant 0 : i32
    return %arg0, %c0_i32 : i32, i32
  }
}

</mosaic_0001>

<bundles_post_ra>
// kernel: pipeline.1
= control target key start
LH: loop header
LB: loop body
LE: loop exit
PB: predicated region body
PF: predicated region fallthrough
CT: control target
= control target key end

     0   :  { %s38_s0 = inlined_call_operand.vmem [shape: f32[4,512], index: 0, kind: input, shape index: {}]   ;;  %s39_s1 = inlined_call_operand.vmem [shape: f32[4,512], index: 1, kind: output, shape index: {}]  }
   0x1   :  { %v8_v0 = vld [vmem:[%s38_s0] sm:$0xff]  ;;  %v9_v1 = vld [vmem:[%s38_s0 + $0x8] sm:$0xff] }
   0x2   :  { %10 = vst [vmem:[%s39_s1] sm:$0xff] %v8_v0 }
   0x3   :  { %11 = vst [vmem:[%s39_s1 + $0x8] sm:$0xff] %v9_v1 }

</bundles_post_ra>
